<compile_context>
chip_gen: v6e
topology: v6e:2x2x1
jax: 0.10.0
libtpu: 0.0.40
codegen_flags: <defaults>
</compile_context>

<pallas_src>
import numpy as np
import jax
import jax.numpy as jnp
from jax import lax
from jax.experimental import pallas as pl
from jax.experimental.pallas import tpu as pltpu


# ------------------------------ Pallas kernel ------------------------------

def _make_custom_loss_kernel(penalty_items, batch):
    """penalty_items: tuple of (class_idx, weight) compile-time constants.
    batch: true (unpadded) batch size used for the mean reductions."""
    inv_b = 1.0 / float(batch)

    def kernel(logits_ref, tgt_ref, o_ref):
        logits = logits_ref[...]                         # (Bp, C) f32
        tgt = tgt_ref[...]                               # (Bp, 1) i32
        Bp, C = logits.shape

        col = lax.broadcasted_iota(jnp.int32, (Bp, C), 1)
        row = lax.broadcasted_iota(jnp.int32, (Bp, 1), 0)
        valid_row = (row < batch).astype(jnp.float32)    # mask padded rows

        # numerically stable softmax / log-softmax (shared exp + sum)
        m = jnp.max(logits, axis=1, keepdims=True)
        z = logits - m
        e = jnp.exp(z)
        s = jnp.sum(e, axis=1, keepdims=True)
        log_probs = z - jnp.log(s)                       # (Bp, C)
        probs = e / s                                    # (Bp, C)

        # cross-entropy (mean reduction): gather-free one-hot select.
        onehot = (col == tgt).astype(jnp.float32)
        ce_rows = -jnp.sum(onehot * log_probs, axis=1, keepdims=True) * valid_row
        total = jnp.sum(ce_rows, axis=0, keepdims=True) * inv_b      # (1, 1)

        # penalty terms: statically unrolled; weights folded as constants.
        for class_idx, weight in penalty_items:
            sel = (col == class_idx).astype(jnp.float32)             # pick column
            non_cls = (tgt != class_idx).astype(jnp.float32) * valid_row
            contrib = jnp.sum(probs * sel, axis=1, keepdims=True) * non_cls
            total = total + (weight * inv_b) * jnp.sum(contrib, axis=0,
                                                       keepdims=True)

        o_ref[...] = total                               # (1, 1) f32

    return kernel


# ------------------------------ host wrapper -------------------------------

def custom_loss(outputs, targets, penalty_items):
    """total_loss = CE(outputs, targets) + sum_k w_k * mean(p_k * (t != k))."""
    B, C = outputs.shape
    Bp = max(8, -(-B // 8) * 8)      # round batch up to a sublane multiple
    logits_p = jnp.pad(outputs.astype(jnp.float32), ((0, Bp - B), (0, 0)))
    tgt_p = jnp.pad(targets.astype(jnp.int32).reshape(B, 1),
                    ((0, Bp - B), (0, 0)), constant_values=-1)

    out = pl.pallas_call(
        _make_custom_loss_kernel(tuple(penalty_items), B),
        out_shape=jax.ShapeDtypeStruct((1, 1), jnp.float32),
        in_specs=[pl.BlockSpec(memory_space=pltpu.MemorySpace.VMEM),
                  pl.BlockSpec(memory_space=pltpu.MemorySpace.VMEM)],
        out_specs=pl.BlockSpec(memory_space=pltpu.MemorySpace.VMEM),
    )(logits_p, tgt_p)
    return out[0, 0]


def make_custom_loss(penalty_weights):
    """Mirrors CustomLoss(base_loss=CrossEntropyLoss, penalty_weights, ...)."""
    items = tuple(sorted((int(k), float(v)) for k, v in penalty_weights.items()))

    @jax.jit
    def loss_fn(outputs, targets):
        return custom_loss(outputs, targets, items)

    return loss_fn


# ----------------------------------- main -----------------------------------

if __name__ == "__main__":
    penalty_weights = {1: 5.0, 2: 5.0}
    # target_class_idxs = [1, 2]  # stored by the module but unused in forward

    B, C = 8, 4                     # small shapes implied by the classifier head
    key = jax.random.PRNGKey(0)
    k1, k2 = jax.random.split(key)
    outputs = jax.random.normal(k1, (B, C), jnp.float32)     # logits
    targets = jax.random.randint(k2, (B,), 0, C, dtype=jnp.int32)

    loss_fn = make_custom_loss(penalty_weights)
    loss = loss_fn(outputs, targets)
    jax.block_until_ready(loss)

    # pure-JAX reference of the PyTorch forward (CrossEntropyLoss mean + penalty)
    logp = jax.nn.log_softmax(outputs, axis=1)
    ce_ref = -jnp.mean(logp[jnp.arange(B), targets])
    probs_ref = jax.nn.softmax(outputs, axis=1)
    pen_ref = 0.0
    for ci, w in penalty_weights.items():
        pen_ref = pen_ref + w * jnp.mean(
            probs_ref[:, ci] * (targets != ci).astype(jnp.float32))
    expected = float(ce_ref + pen_ref)

    got = float(loss)
    assert np.isfinite(got), got
    assert np.allclose(got, expected, rtol=1e-5, atol=1e-5), (got, expected)
    print("KERNEL_OK")
</pallas_src>

<mosaic_0001>
module attributes {stable_mosaic.version = 11 : i64} {
  func.func @kernel(%arg0: memref<8x4xf32, #tpu.memory_space<vmem>>, %arg1: memref<8x1xi32, #tpu.memory_space<vmem>>, %arg2: memref<1x1xf32, #tpu.memory_space<vmem>>) attributes {dimension_semantics = [], scalar_prefetch = 0 : i64, scratch_operands = 0 : i64, tpu.core_type = #tpu.core_type<tc>} {
    %c0 = arith.constant 0 : index
    %c0_0 = arith.constant 0 : index
    %0 = vector.load %arg0[%c0, %c0_0] : memref<8x4xf32, #tpu.memory_space<vmem>>, vector<8x4xf32>
    %c0_1 = arith.constant 0 : index
    %c0_2 = arith.constant 0 : index
    %1 = vector.load %arg1[%c0_1, %c0_2] : memref<8x1xi32, #tpu.memory_space<vmem>>, vector<8x1xi32>
    %2 = tpu.iota {dimensions = array<i32: 1>} : vector<8x4xi32>
    %3 = tpu.iota {dimensions = array<i32: 0>} : vector<8x1xi32>
    %c8_i32 = arith.constant 8 : i32
    %4 = vector.broadcast %c8_i32 : i32 to vector<8x1xi32>
    %5 = arith.cmpi slt, %3, %4 : vector<8x1xi32>
    %6 = arith.extui %5 : vector<8x1xi1> to vector<8x1xi32>
    %7 = arith.sitofp %6 : vector<8x1xi32> to vector<8x1xf32>
    %cst = arith.constant dense<0xFF800000> : vector<8xf32>
    %8 = vector.multi_reduction <maximumf>, %0, %cst [1] : vector<8x4xf32> to vector<8xf32>
    %9 = vector.shape_cast %8 : vector<8xf32> to vector<8x1xf32>
    %10 = vector.broadcast %9 : vector<8x1xf32> to vector<8x4xf32>
    %11 = arith.subf %0, %10 : vector<8x4xf32>
    %12 = math.exp %11 : vector<8x4xf32>
    %cst_3 = arith.constant dense<0.000000e+00> : vector<8xf32>
    %13 = vector.multi_reduction <add>, %12, %cst_3 [1] : vector<8x4xf32> to vector<8xf32>
    %14 = vector.shape_cast %13 : vector<8xf32> to vector<8x1xf32>
    %15 = math.log %14 : vector<8x1xf32>
    %16 = vector.broadcast %15 : vector<8x1xf32> to vector<8x4xf32>
    %17 = arith.subf %11, %16 : vector<8x4xf32>
    %18 = vector.broadcast %14 : vector<8x1xf32> to vector<8x4xf32>
    %19 = arith.divf %12, %18 : vector<8x4xf32>
    %20 = vector.broadcast %1 : vector<8x1xi32> to vector<8x4xi32>
    %21 = arith.cmpi eq, %2, %20 : vector<8x4xi32>
    %22 = arith.extui %21 : vector<8x4xi1> to vector<8x4xi32>
    %23 = arith.sitofp %22 : vector<8x4xi32> to vector<8x4xf32>
    %24 = arith.mulf %23, %17 : vector<8x4xf32>
    %cst_4 = arith.constant dense<0.000000e+00> : vector<8xf32>
    %25 = vector.multi_reduction <add>, %24, %cst_4 [1] : vector<8x4xf32> to vector<8xf32>
    %26 = vector.shape_cast %25 : vector<8xf32> to vector<8x1xf32>
    %cst_5 = arith.constant 0.000000e+00 : f32
    %27 = vector.broadcast %cst_5 : f32 to vector<8x1xf32>
    %28 = arith.subf %27, %26 : vector<8x1xf32>
    %29 = arith.mulf %28, %7 : vector<8x1xf32>
    %cst_6 = arith.constant dense<0.000000e+00> : vector<1xf32>
    %30 = vector.multi_reduction <add>, %29, %cst_6 [0] : vector<8x1xf32> to vector<1xf32>
    %31 = vector.shape_cast %30 : vector<1xf32> to vector<1x1xf32>
    %cst_7 = arith.constant 1.250000e-01 : f32
    %32 = vector.broadcast %cst_7 : f32 to vector<1x1xf32>
    %33 = arith.mulf %31, %32 : vector<1x1xf32>
    %c1_i32 = arith.constant 1 : i32
    %34 = vector.broadcast %c1_i32 : i32 to vector<8x4xi32>
    %35 = arith.cmpi eq, %2, %34 : vector<8x4xi32>
    %36 = arith.extui %35 : vector<8x4xi1> to vector<8x4xi32>
    %37 = arith.sitofp %36 : vector<8x4xi32> to vector<8x4xf32>
    %c1_i32_8 = arith.constant 1 : i32
    %38 = vector.broadcast %c1_i32_8 : i32 to vector<8x1xi32>
    %39 = arith.cmpi ne, %1, %38 : vector<8x1xi32>
    %40 = arith.extui %39 : vector<8x1xi1> to vector<8x1xi32>
    %41 = arith.sitofp %40 : vector<8x1xi32> to vector<8x1xf32>
    %42 = arith.mulf %41, %7 : vector<8x1xf32>
    %43 = arith.mulf %19, %37 : vector<8x4xf32>
    %cst_9 = arith.constant dense<0.000000e+00> : vector<8xf32>
    %44 = vector.multi_reduction <add>, %43, %cst_9 [1] : vector<8x4xf32> to vector<8xf32>
    %45 = vector.shape_cast %44 : vector<8xf32> to vector<8x1xf32>
    %46 = arith.mulf %45, %42 : vector<8x1xf32>
    %cst_10 = arith.constant dense<0.000000e+00> : vector<1xf32>
    %47 = vector.multi_reduction <add>, %46, %cst_10 [0] : vector<8x1xf32> to vector<1xf32>
    %48 = vector.shape_cast %47 : vector<1xf32> to vector<1x1xf32>
    %cst_11 = arith.constant 6.250000e-01 : f32
    %49 = vector.broadcast %cst_11 : f32 to vector<1x1xf32>
    %50 = arith.mulf %49, %48 : vector<1x1xf32>
    %51 = arith.addf %33, %50 : vector<1x1xf32>
    %c2_i32 = arith.constant 2 : i32
    %52 = vector.broadcast %c2_i32 : i32 to vector<8x4xi32>
    %53 = arith.cmpi eq, %2, %52 : vector<8x4xi32>
    %54 = arith.extui %53 : vector<8x4xi1> to vector<8x4xi32>
    %55 = arith.sitofp %54 : vector<8x4xi32> to vector<8x4xf32>
    %c2_i32_12 = arith.constant 2 : i32
    %56 = vector.broadcast %c2_i32_12 : i32 to vector<8x1xi32>
    %57 = arith.cmpi ne, %1, %56 : vector<8x1xi32>
    %58 = arith.extui %57 : vector<8x1xi1> to vector<8x1xi32>
    %59 = arith.sitofp %58 : vector<8x1xi32> to vector<8x1xf32>
    %60 = arith.mulf %59, %7 : vector<8x1xf32>
    %61 = arith.mulf %19, %55 : vector<8x4xf32>
    %cst_13 = arith.constant dense<0.000000e+00> : vector<8xf32>
    %62 = vector.multi_reduction <add>, %61, %cst_13 [1] : vector<8x4xf32> to vector<8xf32>
    %63 = vector.shape_cast %62 : vector<8xf32> to vector<8x1xf32>
    %64 = arith.mulf %63, %60 : vector<8x1xf32>
    %cst_14 = arith.constant dense<0.000000e+00> : vector<1xf32>
    %65 = vector.multi_reduction <add>, %64, %cst_14 [0] : vector<8x1xf32> to vector<1xf32>
    %66 = vector.shape_cast %65 : vector<1xf32> to vector<1x1xf32>
    %cst_15 = arith.constant 6.250000e-01 : f32
    %67 = vector.broadcast %cst_15 : f32 to vector<1x1xf32>
    %68 = arith.mulf %67, %66 : vector<1x1xf32>
    %69 = arith.addf %51, %68 : vector<1x1xf32>
    %c0_16 = arith.constant 0 : index
    %c0_17 = arith.constant 0 : index
    %70 = vector.load %arg2[%c0_16, %c0_17] : memref<1x1xf32, #tpu.memory_space<vmem>>, vector<1x1xf32>
    tpu.vector_store %arg2[%c0_16, %c0_17], %69 {strides = array<i32>} : memref<1x1xf32, #tpu.memory_space<vmem>>, vector<1x1xf32>,
    return
  }
}

</mosaic_0001>

<bundles_post_ra>
// kernel: loss_fn.1
= control target key start
LH: loop header
LB: loop body
LE: loop exit
PB: predicated region body
PF: predicated region fallthrough
CT: control target
= control target key end

     0   :  { %vm21_vm0 = vcmask 31744   ;;  %s186_s0 = inlined_call_operand.vmem [shape: f32[8,4], index: 0, kind: input, shape index: {}]   ;;  %s187_s1 = inlined_call_operand.vmem [shape: s32[8,1], index: 1, kind: input, shape index: {}]   ;;  %s188_s2 = inlined_call_operand.hbm [shape: f32[1,1], index: 2, kind: output, shape index: {}]  }
   0x1   :  { %v12_v0 = vld [vmem:[%s186_s0] sm:$0xff] }
   0x2   :  { %7 = vsyncpa [#allocation3], 0  ;;  %v22_v1 = vsel %vm21_vm0, %v12_v0, -inf  ;;  %v13_v2 = vld [vmem:[%s187_s1] sm:$0xff]  ;;  %v152_v3 = vmov 0   ;;  %v14_v10 = vlaneseq  ;;  %v153_v16 = vmov 0.0  }
   0x3   :  { %23 = vmax.xlane.f32.xlu0 %v22_v1  ;;  %122 = vset.pattern.permute.xlu1 %v152_v3  ;;  %vm58_vm4 = vcmp.ne.s32.totalorder %v13_v2, 1  ;;  %vm67_vm5 = vcmask 7168   ;;  %vm80_vm6 = vcmp.ne.s32.totalorder %v13_v2, 2  ;;  %s154_s0 = smov [#allocation2]   ;;  %vm98_vm7 = vcmask 0  }
   0x4   :  { %123 = vset.pattern.permute.xlu0 %v152_v3  ;;  %37 = vperm.xlu1 %122, %v13_v2   ;;  %v15_v11 = vand.u32 127, %v14_v10  ;;  %v116_v28 = vsel %vm58_vm4, 1.0, %v153_v16  ;;  %v118_v34 = vsel %vm80_vm6, 1.0, %v153_v16  ;;  %s106_s1 = sshll.u32 %s154_s0, 4  ;;  %s107_s1 = int_to_ptr.vmem [resolvable:$true] %s106_s1 }
   0x5   :  { %s130_s13 = scalar_lea.vmem %s107_s1, 16  ;;  %s134_s14 = scalar_lea.vmem %s107_s1, 32 }
   0x6   :  { %vm55_vm1 = vcmp.eq.s32.totalorder %v15_v11, 1  ;;  %vm77_vm3 = vcmp.eq.s32.totalorder %v15_v11, 2  ;;  %p131_p0 = scmp.ne.s32.totalorder %s107_s1, %s130_s13  ;;  %p135_p1 = scmp.lt.s32.totalorder %s107_s1, %s107_s1 }
   0x7   :  { %v115_v17 = vsel %vm55_vm1, 1.0, %v153_v16  ;;  %v117_v22 = vsel %vm77_vm3, 1.0, %v153_v16  ;;  %p136_p2 = scmp.lt.s32.totalorder %s134_s14, %s130_s13 }
   0x9   :  { %p137_p3 = por %p136_p2, %p135_p1 }
   0xb   :  { %p138_p4 = pnand %p137_p3, %p131_p0 }
  0x7f   :  { %v38_v12 = vpop.permute.xlu1 %37 }
  0x80   :  { %vm39_vm2 = vcmp.eq.s32.totalorder %v15_v11, %v38_v12 }
  0x81   :  { %v114_v18 = vsel %vm39_vm2, 1.0, %v153_v16 }
  0x8c   :  { %v24_v4 = vpop.xlane.xlu0 %23 }
  0x8d   :  { %v25_v5 = vsub.f32 %v12_v0, %v24_v4 }
  0x8f   :  { %v26_v6 = vmul.f32 1.442695, %v25_v5 }
  0x91   :  { %124 = vpow2.f32 %v26_v6 }
  0x9e   :  { %v125_v7 = vpop.eup %124 }
  0x9f   :  { %v28_v8 = vsel %vm21_vm0, %v125_v7, 0.0 }
  0xa0   :  { %29 = vadd.xlane.f32.xlu0 %v28_v8 }
 0x129   :  { %v30_v9 = vpop.xlane.xlu0 %29 }
 0x12a   :  { %126 = vlog2.f32 %v30_v9 }
 0x12b   :  { %128 = vrcp.f32 %v30_v9 }
 0x137   :  { %v127_v13 = vpop.eup %126 }
 0x138   :  { %v129_v14 = vpop.eup %128  ;;  %v32_v15 = vmul.f32 0.6931472, %v127_v13 }
 0x139   :  { %v35_v19 = vmul.f32 %v129_v14, %v125_v7 }
 0x13a   :  { %v33_v20 = vsub.f32 %v25_v5, %v32_v15 }
 0x13b   :  { %v62_v21 = vmul.f32 %v115_v17, %v35_v19  ;;  %v84_v26 = vmul.f32 %v117_v22, %v35_v19 }
 0x13c   :  { %v42_v23 = vmul.f32 %v114_v18, %v33_v20 }
 0x13d   :  { %v63_v24 = vsel %vm21_vm0, %v62_v21, 0.0  ;;  %v85_v27 = vsel %vm21_vm0, %v84_v26, 0.0 }
 0x13e   :  { %64 = vadd.xlane.f32.xlu1 %v63_v24  ;;  %v43_v25 = vsel %vm21_vm0, %v42_v23, 0.0 }
 0x13f   :  { %44 = vadd.xlane.f32.xlu0 %v43_v25 }
 0x143   :  { %86 = vadd.xlane.f32.xlu0 %v85_v27 }
 0x1c7   :  { %v65_v29 = vpop.xlane.xlu1 %64 }
 0x1c8   :  { %v66_v30 = vmul.f32 %v116_v28, %v65_v29  ;;  %v45_v31 = vpop.xlane.xlu0 %44 }
 0x1c9   :  { %v46_v32 = vsub.f32 0.0, %v45_v31 }
 0x1ca   :  { %v68_v33 = vsel %vm67_vm5, %v66_v30, 0.0 }
 0x1cb   :  { %v69_v35 = vrot.slane %v68_v33, 4  ;;  %v48_v36 = vrot.slane %v46_v32, 4 }
 0x1cc   :  { %v87_v37 = vpop.xlane.xlu0 %86 }
 0x1cd   :  { %v70_v38 = vadd.f32 %v69_v35, %v68_v33  ;;  %v49_v39 = vadd.f32 %v48_v36, %v46_v32  ;;  %v88_v40 = vmul.f32 %v118_v34, %v87_v37 }
 0x1cf   :  { %v71_v41 = vrot.slane %v70_v38, 2  ;;  %v50_v42 = vrot.slane %v49_v39, 2  ;;  %v89_v43 = vsel %vm67_vm5, %v88_v40, 0.0 }
 0x1d0   :  { %v90_v44 = vrot.slane %v89_v43, 4 }
 0x1d1   :  { %v72_v45 = vadd.f32 %v71_v41, %v70_v38  ;;  %v51_v46 = vadd.f32 %v50_v42, %v49_v39 }
 0x1d2   :  { %v91_v47 = vadd.f32 %v90_v44, %v89_v43 }
 0x1d3   :  { %v73_v48 = vrot.slane %v72_v45, 1  ;;  %v52_v49 = vrot.slane %v51_v46, 1 }
 0x1d4   :  { %v92_v50 = vrot.slane %v91_v47, 2 }
 0x1d5   :  { %v74_v51 = vadd.f32 %v73_v48, %v72_v45  ;;  %v53_v52 = vadd.f32 %v52_v49, %v51_v46 }
 0x1d6   :  { %v93_v53 = vadd.f32 %v92_v50, %v91_v47 }
 0x1d7   :  { %v54_v54 = vmul.f32 0.125, %v53_v52  ;;  %v75_v56 = vmul.f32 0.625, %v74_v51 }
 0x1d8   :  { %v94_v55 = vrot.slane %v93_v53, 1 }
 0x1d9   :  { %v76_v58 = vadd.f32 %v75_v56, %v54_v54 }
 0x1da   :  { %v95_v57 = vadd.f32 %v94_v55, %v93_v53 }
 0x1dc   :  { %v96_v59 = vmul.f32 0.625, %v95_v57 }
 0x1de   :  { %v97_v60 = vadd.f32 %v96_v59, %v76_v58 }
 0x1e0   :  { %99 = vst.msk [vmem:[#allocation2] sm:$0x1] %vm98_vm7, %v97_v60 }
 0x1e1   :  { %141 = shalt.err (!%p138_p4)
}
 0x1e2   :  { %109 = dma.vmem_to_hbm [thread:$0]  %s107_s1, 16, %s188_s2, [#allocation3]  }
 0x1e3   :  { %150 = dma.done.wait [#allocation3], 16  }
 0x1e4   :  { %151 = vsyncadd [#allocation3], 4294967280 }
 0x1e5   :  { %113 = vsyncpa [#allocation3], 1 }

</bundles_post_ra>
